<compile_context>
chip_gen: v7x
topology: tpu7x:2x2x1
jax: 0.10.0
libtpu: 0.0.40
codegen_flags: <defaults>
</compile_context>

<pallas_src>
import functools

import jax
import jax.numpy as jnp
from jax.experimental import pallas as pl
from jax.experimental.pallas import tpu as pltpu

HL1 = 20
HL2 = 20
IN_FEATURES = 4000
OUT_FEATURES = 2


def mlp_kernel(x_ref, w1_ref, b1_ref, w2_ref, b2_ref, w3_ref, b3_ref, o_ref):
    # x tile: (TM, K_pad) bf16 ; w1: (K_pad, 20) bf16 ; accumulate in f32 on MXU.
    h1 = jnp.dot(x_ref[...], w1_ref[...], preferred_element_type=jnp.float32)
    h1 = jnp.maximum(h1 + b1_ref[...], 0.0)                     # fc1 + ReLU
    h2 = jnp.dot(h1, w2_ref[...], preferred_element_type=jnp.float32)
    h2 = jnp.maximum(h2 + b2_ref[...], 0.0)                     # fc3 + ReLU
    y = jnp.dot(h2, w3_ref[...], preferred_element_type=jnp.float32) + b3_ref[...]
    o_ref[...] = y.astype(o_ref.dtype)                          # fc2


def net_forward(x, w1, b1, w2, b2, w3, b3, *, tm=512):
    B, K = x.shape

    # --- Pad feature dim to a multiple of 128 lanes (4000 -> 4096). ---------
    k_pad = pl.cdiv(K, 128) * 128
    if k_pad != K:
        x = jnp.pad(x, ((0, 0), (0, k_pad - K)))
        w1 = jnp.pad(w1, ((0, k_pad - K), (0, 0)))

    # --- Stream the dominant operands as bf16 (f32 accumulation in-kernel). -
    x = x.astype(jnp.bfloat16)
    w1 = w1.astype(jnp.bfloat16)

    # --- Batch tiling: TM rows per grid step, padded to a multiple of TM. ---
    tm = min(tm, max(8, pl.cdiv(B, 8) * 8))      # small-batch friendly tile
    b_pad = pl.cdiv(B, tm) * tm
    if b_pad != B:
        x = jnp.pad(x, ((0, b_pad - B), (0, 0)))
    grid = (b_pad // tm,)

    resident = lambda shape: pl.BlockSpec(shape, lambda i: (0, 0))

    cost = pl.CostEstimate(
        flops=2 * b_pad * (k_pad * HL1 + HL1 * HL2 + HL2 * OUT_FEATURES),
        transcendentals=0,
        bytes_accessed=(b_pad * k_pad * 2 + k_pad * HL1 * 2
                        + HL1 * HL2 * 4 + HL2 * OUT_FEATURES * 4
                        + (HL1 + HL2 + OUT_FEATURES) * 4
                        + b_pad * OUT_FEATURES * 4),
    )

    out = pl.pallas_call(
        mlp_kernel,
        out_shape=jax.ShapeDtypeStruct((b_pad, OUT_FEATURES), jnp.float32),
        grid=grid,
        in_specs=[
            pl.BlockSpec((tm, k_pad), lambda i: (i, 0)),   # x: tiled over batch
            resident(w1.shape), resident(b1.shape),        # weights stay in VMEM
            resident(w2.shape), resident(b2.shape),
            resident(w3.shape), resident(b3.shape),
        ],
        out_specs=pl.BlockSpec((tm, OUT_FEATURES), lambda i: (i, 0)),
        compiler_params=pltpu.CompilerParams(
            dimension_semantics=("parallel",),             # megacore on v7x
        ),
        cost_estimate=cost,
    )(x, w1, b1, w2, b2, w3, b3)

    return out[:B]


def init_linear_params(key, in_features, out_features):
    # Deterministic init mimicking torch.nn.Linear: U(-1/sqrt(in), 1/sqrt(in)).
    kw, kb = jax.random.split(key)
    bound = 1.0 / jnp.sqrt(jnp.float32(in_features))
    # Stored as (in, out) so the kernel does x @ W.
    w = jax.random.uniform(kw, (in_features, out_features), jnp.float32, -bound, bound)
    b = jax.random.uniform(kb, (1, out_features), jnp.float32, -bound, bound)
    return w, b


if __name__ == "__main__":
    key = jax.random.PRNGKey(0)
    k_x, k1, k2, k3 = jax.random.split(key, 4)

    batch = 8
    x = jax.random.normal(k_x, (batch, IN_FEATURES), jnp.float32)

    w1, b1 = init_linear_params(k1, IN_FEATURES, HL1)   # fc1
    w2, b2 = init_linear_params(k2, HL1, HL2)           # fc3
    w3, b3 = init_linear_params(k3, HL2, OUT_FEATURES)  # fc2

    fwd = jax.jit(functools.partial(net_forward))
    out = jax.block_until_ready(fwd(x, w1, b1, w2, b2, w3, b3))

    # Reference check in plain JAX (f32). The kernel streams x/w1 as bf16 with
    # f32 accumulation, so the tolerance is loosened accordingly.
    ref = jnp.maximum(x @ w1 + b1, 0.0)
    ref = jnp.maximum(ref @ w2 + b2, 0.0)
    ref = ref @ w3 + b3
    assert out.shape == (batch, OUT_FEATURES)
    assert jnp.allclose(out, ref, atol=2e-2, rtol=2e-2), (
        f"max abs err {jnp.max(jnp.abs(out - ref))}")

    print("KERNEL_OK")
</pallas_src>

<mosaic_0001>
module attributes {stable_mosaic.version = 11 : i64} {
  func.func @mlp_kernel(%arg0: i32, %arg1: memref<8x4096xbf16, #tpu.memory_space<vmem>>, %arg2: memref<4096x20xbf16, #tpu.memory_space<vmem>>, %arg3: memref<1x20xf32, #tpu.memory_space<vmem>>, %arg4: memref<20x20xf32, #tpu.memory_space<vmem>>, %arg5: memref<1x20xf32, #tpu.memory_space<vmem>>, %arg6: memref<20x2xf32, #tpu.memory_space<vmem>>, %arg7: memref<1x2xf32, #tpu.memory_space<vmem>>, %arg8: memref<8x2xf32, #tpu.memory_space<vmem>>) attributes {dimension_semantics = [#tpu.dimension_semantics<parallel>], iteration_bounds = array<i64: 1>, scalar_prefetch = 0 : i64, scratch_operands = 0 : i64, tpu.core_type = #tpu.core_type<tc>, window_params = [{transform_indices = @transform_0, window_bounds = array<i64: 8, 4096>}, {pipeline_mode = #tpu.pipeline_mode<synchronous>, transform_indices = @transform_1, window_bounds = array<i64: 4096, 20>}, {pipeline_mode = #tpu.pipeline_mode<synchronous>, transform_indices = @transform_2, window_bounds = array<i64: 1, 20>}, {pipeline_mode = #tpu.pipeline_mode<synchronous>, transform_indices = @transform_3, window_bounds = array<i64: 20, 20>}, {pipeline_mode = #tpu.pipeline_mode<synchronous>, transform_indices = @transform_4, window_bounds = array<i64: 1, 20>}, {pipeline_mode = #tpu.pipeline_mode<synchronous>, transform_indices = @transform_5, window_bounds = array<i64: 20, 2>}, {pipeline_mode = #tpu.pipeline_mode<synchronous>, transform_indices = @transform_6, window_bounds = array<i64: 1, 2>}, {transform_indices = @transform_7, window_bounds = array<i64: 8, 2>}]} {
    %c0 = arith.constant 0 : index
    %c0_0 = arith.constant 0 : index
    %0 = vector.load %arg1[%c0, %c0_0] : memref<8x4096xbf16, #tpu.memory_space<vmem>>, vector<8x4096xbf16>
    %c0_1 = arith.constant 0 : index
    %c0_2 = arith.constant 0 : index
    %1 = vector.load %arg2[%c0_1, %c0_2] : memref<4096x20xbf16, #tpu.memory_space<vmem>>, vector<4096x20xbf16>
    %cst = arith.constant dense<0.000000e+00> : vector<8x20xf32>
    %2 = tpu.matmul %0, %1, %cst {dimension_numbers = #tpu.dot_dimension_numbers<[1], [0], [0], [1], [0, 0, 1, 1], [], []>} : vector<8x4096xbf16>, vector<4096x20xbf16>, vector<8x20xf32> -> vector<8x20xf32>
    %c0_3 = arith.constant 0 : index
    %c0_4 = arith.constant 0 : index
    %3 = vector.load %arg3[%c0_3, %c0_4] : memref<1x20xf32, #tpu.memory_space<vmem>>, vector<1x20xf32>
    %4 = vector.broadcast %3 : vector<1x20xf32> to vector<8x20xf32>
    %5 = arith.addf %2, %4 : vector<8x20xf32>
    %cst_5 = arith.constant 0.000000e+00 : f32
    %6 = vector.broadcast %cst_5 : f32 to vector<8x20xf32>
    %7 = arith.maximumf %5, %6 : vector<8x20xf32>
    %c0_6 = arith.constant 0 : index
    %c0_7 = arith.constant 0 : index
    %8 = vector.load %arg4[%c0_6, %c0_7] : memref<20x20xf32, #tpu.memory_space<vmem>>, vector<20x20xf32>
    %cst_8 = arith.constant dense<0.000000e+00> : vector<8x20xf32>
    %9 = tpu.matmul %7, %8, %cst_8 {dimension_numbers = #tpu.dot_dimension_numbers<[1], [0], [0], [1], [0, 0, 1, 1], [], []>} : vector<8x20xf32>, vector<20x20xf32>, vector<8x20xf32> -> vector<8x20xf32>
    %c0_9 = arith.constant 0 : index
    %c0_10 = arith.constant 0 : index
    %10 = vector.load %arg5[%c0_9, %c0_10] : memref<1x20xf32, #tpu.memory_space<vmem>>, vector<1x20xf32>
    %11 = vector.broadcast %10 : vector<1x20xf32> to vector<8x20xf32>
    %12 = arith.addf %9, %11 : vector<8x20xf32>
    %cst_11 = arith.constant 0.000000e+00 : f32
    %13 = vector.broadcast %cst_11 : f32 to vector<8x20xf32>
    %14 = arith.maximumf %12, %13 : vector<8x20xf32>
    %c0_12 = arith.constant 0 : index
    %c0_13 = arith.constant 0 : index
    %15 = vector.load %arg6[%c0_12, %c0_13] : memref<20x2xf32, #tpu.memory_space<vmem>>, vector<20x2xf32>
    %cst_14 = arith.constant dense<0.000000e+00> : vector<8x2xf32>
    %16 = tpu.matmul %14, %15, %cst_14 {dimension_numbers = #tpu.dot_dimension_numbers<[1], [0], [0], [1], [0, 0, 1, 1], [], []>} : vector<8x20xf32>, vector<20x2xf32>, vector<8x2xf32> -> vector<8x2xf32>
    %c0_15 = arith.constant 0 : index
    %c0_16 = arith.constant 0 : index
    %17 = vector.load %arg7[%c0_15, %c0_16] : memref<1x2xf32, #tpu.memory_space<vmem>>, vector<1x2xf32>
    %18 = vector.broadcast %17 : vector<1x2xf32> to vector<8x2xf32>
    %19 = arith.addf %16, %18 : vector<8x2xf32>
    %c0_17 = arith.constant 0 : index
    %c0_18 = arith.constant 0 : index
    %20 = vector.load %arg8[%c0_17, %c0_18] : memref<8x2xf32, #tpu.memory_space<vmem>>, vector<8x2xf32>
    tpu.vector_store %arg8[%c0_17, %c0_18], %19 {strides = array<i32>} : memref<8x2xf32, #tpu.memory_space<vmem>>, vector<8x2xf32>,
    return
  }
  func.func @transform_0(%arg0: i32) -> (i32, i32) {
    %c0_i32 = arith.constant 0 : i32
    %c0_i32_0 = arith.constant 0 : i32
    return %arg0, %c0_i32 : i32, i32
  }
  func.func @transform_1(%arg0: i32) -> (i32, i32) {
    %c0_i32 = arith.constant 0 : i32
    %c0_i32_0 = arith.constant 0 : i32
    %c0_i32_1 = arith.constant 0 : i32
    return %c0_i32, %c0_i32_0 : i32, i32
  }
  func.func @transform_2(%arg0: i32) -> (i32, i32) {
    %c0_i32 = arith.constant 0 : i32
    %c0_i32_0 = arith.constant 0 : i32
    %c0_i32_1 = arith.constant 0 : i32
    return %c0_i32, %c0_i32_0 : i32, i32
  }
  func.func @transform_3(%arg0: i32) -> (i32, i32) {
    %c0_i32 = arith.constant 0 : i32
    %c0_i32_0 = arith.constant 0 : i32
    %c0_i32_1 = arith.constant 0 : i32
    return %c0_i32, %c0_i32_0 : i32, i32
  }
  func.func @transform_4(%arg0: i32) -> (i32, i32) {
    %c0_i32 = arith.constant 0 : i32
    %c0_i32_0 = arith.constant 0 : i32
    %c0_i32_1 = arith.constant 0 : i32
    return %c0_i32, %c0_i32_0 : i32, i32
  }
  func.func @transform_5(%arg0: i32) -> (i32, i32) {
    %c0_i32 = arith.constant 0 : i32
    %c0_i32_0 = arith.constant 0 : i32
    %c0_i32_1 = arith.constant 0 : i32
    return %c0_i32, %c0_i32_0 : i32, i32
  }
  func.func @transform_6(%arg0: i32) -> (i32, i32) {
    %c0_i32 = arith.constant 0 : i32
    %c0_i32_0 = arith.constant 0 : i32
    %c0_i32_1 = arith.constant 0 : i32
    return %c0_i32, %c0_i32_0 : i32, i32
  }
  func.func @transform_7(%arg0: i32) -> (i32, i32) {
    %c0_i32 = arith.constant 0 : i32
    %c0_i32_0 = arith.constant 0 : i32
    return %arg0, %c0_i32 : i32, i32
  }
}

</mosaic_0001>

<bundles_post_ra>
// kernel: net_forward.1
= control target key start
LH: loop header
LB: loop body
LE: loop exit
PB: predicated region body
PF: predicated region fallthrough
CT: control target
= control target key end

     0   :  { %vm2865_vm0 = vcmask 1043456   ;;  %vm4004_vm1 = vmmov 0   ;;  %vm2861_vm2 = vcmask 162816   ;;  %vm3026_vm3 = vcmask 15360   ;;  %s4893_s1 = inlined_call_operand.vmem [shape: bf16[4096,20], index: 1, kind: input, shape index: {}]   ;;  %s4894_s0 = inlined_call_operand.vmem [shape: bf16[8,4096], index: 0, kind: input, shape index: {}]   ;;  %s4895_s2 = inlined_call_operand.vmem [shape: f32[1,20], index: 2, kind: input, shape index: {}]   ;;  %s4896_s3 = inlined_call_operand.vmem [shape: f32[20,20], index: 3, kind: input, shape index: {}]   ;;  %s4897_s5 = inlined_call_operand.vmem [shape: f32[20,2], index: 5, kind: input, shape index: {}]   ;;  %s4898_s4 = inlined_call_operand.vmem [shape: f32[1,20], index: 4, kind: input, shape index: {}]   ;;  %s4899_s6 = inlined_call_operand.vmem [shape: f32[1,2], index: 6, kind: input, shape index: {}]   ;;  %s4900_s7 = inlined_call_operand.vmem [shape: f32[8,2], index: 7, kind: output, shape index: {}]  }
   0x1   :  { %v3714_v0 = vld [vmem:[%s4893_s1 + $0x40] sm:$0xff]   ;;  %v3718_v4 = vld [vmem:[%s4893_s1 + $0x48] sm:$0xff]   ;;  %v3722_v8 = vld [vmem:[%s4893_s1 + $0x50] sm:$0xff]  }
   0x2   :  { %v3715_v1 = vld [vmem:[%s4893_s1 + $0xc0] sm:$0xff]   ;;  %3327 = vmatprep.subr.bf16.mxu0 %v3714_v0  ;;  %v3719_v5 = vld [vmem:[%s4893_s1 + $0xc8] sm:$0xff]   ;;  %v3723_v9 = vld [vmem:[%s4893_s1 + $0xd0] sm:$0xff]  }
   0x3   :  { %v3716_v2 = vld [vmem:[%s4893_s1] sm:$0xff]   ;;  %3349 = vmatprep.subr.bf16.mxu1 %v3715_v1  ;;  %v3720_v6 = vld [vmem:[%s4893_s1 + $0x8] sm:$0xff]   ;;  %v3724_v10 = vld [vmem:[%s4893_s1 + $0x10] sm:$0xff]  }
   0x4   :  { %v3717_v3 = vld [vmem:[%s4893_s1 + $0x80] sm:$0xff]   ;;  %3328 = vmatpush3.bf16.msra.mxu0 %v3716_v2  ;;  %v3721_v7 = vld [vmem:[%s4893_s1 + $0x88] sm:$0xff]   ;;  %v3725_v11 = vld [vmem:[%s4893_s1 + $0x90] sm:$0xff]  }
   0x5   :  { %3350 = vmatpush3.bf16.msra.mxu1 %v3717_v3  ;;  %3329 = vmatprep.subr.bf16.mxu0 %v3718_v4  ;;  %v3726_v12 = vld [vmem:[%s4893_s1 + $0x58] sm:$0xff]   ;;  %v3730_v16 = vld [vmem:[%s4893_s1 + $0x60] sm:$0xff]   ;;  %v3734_v20 = vld [vmem:[%s4893_s1 + $0x68] sm:$0xff]  }
   0x6   :  { %3351 = vmatprep.subr.bf16.mxu1 %v3719_v5  ;;  %v3727_v13 = vld [vmem:[%s4893_s1 + $0xd8] sm:$0xff]   ;;  %v3731_v17 = vld [vmem:[%s4893_s1 + $0xe0] sm:$0xff]   ;;  %v3735_v21 = vld [vmem:[%s4893_s1 + $0xe8] sm:$0xff]  }
   0x7   :  { %v3728_v14 = vld [vmem:[%s4893_s1 + $0x18] sm:$0xff]   ;;  %v3732_v18 = vld [vmem:[%s4893_s1 + $0x20] sm:$0xff]   ;;  %v3736_v22 = vld [vmem:[%s4893_s1 + $0x28] sm:$0xff]  }
   0x8   :  { %3330 = vmatpush3.bf16.msra.mxu0 %v3720_v6  ;;  %v3729_v15 = vld [vmem:[%s4893_s1 + $0x98] sm:$0xff]   ;;  %v3733_v19 = vld [vmem:[%s4893_s1 + $0xa0] sm:$0xff]   ;;  %v3737_v23 = vld [vmem:[%s4893_s1 + $0xa8] sm:$0xff]  }
   0x9   :  { %3352 = vmatpush3.bf16.msra.mxu1 %v3721_v7  ;;  %3331 = vmatprep.subr.bf16.mxu0 %v3722_v8  ;;  %v3738_v24 = vld [vmem:[%s4893_s1 + $0x70] sm:$0xff]   ;;  %v3742_v28 = vld [vmem:[%s4893_s1 + $0x78] sm:$0xff]   ;;  %v27_v32 = vld [vmem:[%s4894_s0] sm:$0xff] }
   0xa   :  { %3353 = vmatprep.subr.bf16.mxu1 %v3723_v9  ;;  %v3739_v25 = vld [vmem:[%s4893_s1 + $0xf0] sm:$0xff]   ;;  %v3743_v29 = vld [vmem:[%s4893_s1 + $0xf8] sm:$0xff]   ;;  %v28_v33 = vld [vmem:[%s4894_s0 + $0x8] sm:$0xff]  ;;  %v3033_v34 = vcombine.low %v27_v32, %v27_v32  ;;  %v3034_v35 = vcombine.high %v27_v32, %v27_v32 }
   0xb   :  { %v3740_v26 = vld [vmem:[%s4893_s1 + $0x30] sm:$0xff]   ;;  %v3744_v30 = vld [vmem:[%s4893_s1 + $0x38] sm:$0xff]   ;;  %v3035_v36 = vcombine.low %v28_v33, %v28_v33  ;;  %v3036_v37 = vcombine.high %v28_v33, %v28_v33  ;;  %v3750_v38 = vld [vmem:[%s4893_s1 + $0x140] sm:$0xff]  }
   0xc   :  { %3332 = vmatpush3.bf16.msra.mxu0 %v3724_v10  ;;  %v3741_v27 = vld [vmem:[%s4893_s1 + $0xb0] sm:$0xff]   ;;  %v3745_v31 = vld [vmem:[%s4893_s1 + $0xb8] sm:$0xff]   ;;  %v3751_v39 = vld [vmem:[%s4893_s1 + $0x1c0] sm:$0xff]   ;;  %2242 = vmatprep.mubr.bf16.mxu0 %v3034_v35 }
   0xd   :  { %3354 = vmatpush3.bf16.msra.mxu1 %v3725_v11  ;;  %3333 = vmatprep.subr.bf16.mxu0 %v3726_v12  ;;  %v3752_v40 = vld [vmem:[%s4893_s1 + $0x100] sm:$0xff]   ;;  %v3754_v42 = vld [vmem:[%s4893_s1 + $0x148] sm:$0xff]   ;;  %v3758_v46 = vld [vmem:[%s4893_s1 + $0x150] sm:$0xff]  }
   0xe   :  { %3355 = vmatprep.subr.bf16.mxu1 %v3727_v13  ;;  %2282 = vmatprep.mubr.bf16.mxu1 %v3036_v37  ;;  %v3753_v41 = vld [vmem:[%s4893_s1 + $0x180] sm:$0xff]   ;;  %v3755_v43 = vld [vmem:[%s4893_s1 + $0x1c8] sm:$0xff]   ;;  %v3759_v47 = vld [vmem:[%s4893_s1 + $0x1d0] sm:$0xff]  }
   0xf   :  { %v3756_v44 = vld [vmem:[%s4893_s1 + $0x108] sm:$0xff]   ;;  %v3760_v48 = vld [vmem:[%s4893_s1 + $0x110] sm:$0xff]   ;;  %v3762_v50 = vld [vmem:[%s4893_s1 + $0x158] sm:$0xff]  }
  0x10   :  { %3334 = vmatpush3.bf16.msra.mxu0 %v3728_v14  ;;  %v3757_v45 = vld [vmem:[%s4893_s1 + $0x188] sm:$0xff]   ;;  %v3761_v49 = vld [vmem:[%s4893_s1 + $0x190] sm:$0xff]   ;;  %v3763_v51 = vld [vmem:[%s4893_s1 + $0x1d8] sm:$0xff]  }
  0x11   :  { %3356 = vmatpush3.bf16.msra.mxu1 %v3729_v15  ;;  %3335 = vmatprep.subr.bf16.mxu0 %v3730_v16  ;;  %v3764_v52 = vld [vmem:[%s4893_s1 + $0x118] sm:$0xff]   ;;  %v3766_v54 = vld [vmem:[%s4893_s1 + $0x160] sm:$0xff]   ;;  %v3770_v58 = vld [vmem:[%s4893_s1 + $0x168] sm:$0xff]  }
  0x12   :  { %3357 = vmatprep.subr.bf16.mxu1 %v3731_v17  ;;  %v3765_v53 = vld [vmem:[%s4893_s1 + $0x198] sm:$0xff]   ;;  %v3767_v55 = vld [vmem:[%s4893_s1 + $0x1e0] sm:$0xff]   ;;  %v3771_v59 = vld [vmem:[%s4893_s1 + $0x1e8] sm:$0xff]  }
  0x13   :  { %v3768_v56 = vld [vmem:[%s4893_s1 + $0x120] sm:$0xff]   ;;  %v3772_v60 = vld [vmem:[%s4893_s1 + $0x128] sm:$0xff]   ;;  %v3774_v62 = vld [vmem:[%s4893_s1 + $0x170] sm:$0xff]  }
  0x14   :  { %3336 = vmatpush3.bf16.msra.mxu0 %v3732_v18  ;;  %v3769_v57 = vld [vmem:[%s4893_s1 + $0x1a0] sm:$0xff]   ;;  %v3773_v61 = vld [vmem:[%s4893_s1 + $0x1a8] sm:$0xff]   ;;  %v3775_v63 = vld [vmem:[%s4893_s1 + $0x1f0] sm:$0xff]  }
  0x15   :  { %3358 = vmatpush3.bf16.msra.mxu1 %v3733_v19  ;;  %3337 = vmatprep.subr.bf16.mxu0 %v3734_v20  ;;  %v3776_v0 = vld [vmem:[%s4893_s1 + $0x130] sm:$0xff]   ;;  %v3778_v2 = vld [vmem:[%s4893_s1 + $0x178] sm:$0xff]   ;;  %v3786_v12 = vld [vmem:[%s4893_s1 + $0x240] sm:$0xff]  }
  0x16   :  { %3359 = vmatprep.subr.bf16.mxu1 %v3735_v21  ;;  %v3777_v1 = vld [vmem:[%s4893_s1 + $0x1b0] sm:$0xff]   ;;  %v3779_v3 = vld [vmem:[%s4893_s1 + $0x1f8] sm:$0xff]   ;;  %v3787_v13 = vld [vmem:[%s4893_s1 + $0x2c0] sm:$0xff]  }
  0x17   :  { %v3780_v4 = vld [vmem:[%s4893_s1 + $0x138] sm:$0xff]   ;;  %v29_v6 = vld [vmem:[%s4894_s0 + $0x10] sm:$0xff]  ;;  %v3788_v14 = vld [vmem:[%s4893_s1 + $0x200] sm:$0xff]  }
  0x18   :  { %3338 = vmatpush3.bf16.msra.mxu0 %v3736_v22  ;;  %v3781_v5 = vld [vmem:[%s4893_s1 + $0x1b8] sm:$0xff]   ;;  %v3037_v7 = vcombine.low %v29_v6, %v29_v6  ;;  %v3038_v8 = vcombine.high %v29_v6, %v29_v6  ;;  %v3789_v15 = vld [vmem:[%s4893_s1 + $0x280] sm:$0xff]   ;;  %v3790_v16 = vld [vmem:[%s4893_s1 + $0x248] sm:$0xff]  }
  0x19   :  { %3360 = vmatpush3.bf16.msra.mxu1 %v3737_v23  ;;  %3339 = vmatprep.subr.bf16.mxu0 %v3738_v24  ;;  %v30_v9 = vld [vmem:[%s4894_s0 + $0x18] sm:$0xff]  ;;  %v3791_v17 = vld [vmem:[%s4893_s1 + $0x2c8] sm:$0xff]   ;;  %v3794_v20 = vld [vmem:[%s4893_s1 + $0x250] sm:$0xff]  }
  0x1a   :  { %3361 = vmatprep.subr.bf16.mxu1 %v3739_v25  ;;  %v3039_v10 = vcombine.low %v30_v9, %v30_v9  ;;  %v3040_v11 = vcombine.high %v30_v9, %v30_v9  ;;  %v3792_v18 = vld [vmem:[%s4893_s1 + $0x208] sm:$0xff]   ;;  %v3795_v21 = vld [vmem:[%s4893_s1 + $0x2d0] sm:$0xff]   ;;  %v3798_v24 = vld [vmem:[%s4893_s1 + $0x258] sm:$0xff]  }
  0x1b   :  { %v3793_v19 = vld [vmem:[%s4893_s1 + $0x288] sm:$0xff]   ;;  %v3796_v22 = vld [vmem:[%s4893_s1 + $0x210] sm:$0xff]   ;;  %v3799_v25 = vld [vmem:[%s4893_s1 + $0x2d8] sm:$0xff]  }
  0x1c   :  { %3340 = vmatpush3.bf16.msra.mxu0 %v3740_v26  ;;  %v3797_v23 = vld [vmem:[%s4893_s1 + $0x290] sm:$0xff]   ;;  %v3800_v26 = vld [vmem:[%s4893_s1 + $0x218] sm:$0xff]   ;;  %v3806_v32 = vld [vmem:[%s4893_s1 + $0x268] sm:$0xff]  }
  0x1d   :  { %3362 = vmatpush3.bf16.msra.mxu1 %v3741_v27  ;;  %3341 = vmatprep.subr.bf16.mxu0 %v3742_v28  ;;  %v3801_v27 = vld [vmem:[%s4893_s1 + $0x298] sm:$0xff]   ;;  %v3802_v28 = vld [vmem:[%s4893_s1 + $0x260] sm:$0xff]   ;;  %v3807_v33 = vld [vmem:[%s4893_s1 + $0x2e8] sm:$0xff]  }
  0x1e   :  { %3363 = vmatprep.subr.bf16.mxu1 %v3743_v29  ;;  %v3803_v29 = vld [vmem:[%s4893_s1 + $0x2e0] sm:$0xff]   ;;  %v3809_v35 = vld [vmem:[%s4893_s1 + $0x2a8] sm:$0xff]   ;;  %v3811_v37 = vld [vmem:[%s4893_s1 + $0x2f0] sm:$0xff]  }
  0x1f   :  { %v3842_v6 = vld [vmem:[%s4893_s1 + $0x368] sm:$0xff]  }
  0x20   :  { %3342 = vmatpush3.bf16.msra.mxu0 %v3744_v30  ;;  %v3804_v30 = vld [vmem:[%s4893_s1 + $0x220] sm:$0xff]   ;;  %v3845_v9 = vld [vmem:[%s4893_s1 + $0x3a8] sm:$0xff]  }
  0x21   :  { %3364 = vmatpush3.bf16.msra.mxu1 %v3745_v31  ;;  %3371 = vmatprep.subr.bf16.mxu0 %v3750_v38  ;;  %v3805_v31 = vld [vmem:[%s4893_s1 + $0x2a0] sm:$0xff]   ;;  %v3812_v38 = vld [vmem:[%s4893_s1 + $0x230] sm:$0xff]  }
  0x22   :  { %3393 = vmatprep.subr.bf16.mxu1 %v3751_v39  ;;  %v3813_v39 = vld [vmem:[%s4893_s1 + $0x2b0] sm:$0xff]  }
  0x23   :  { %2243 = vmatmul.mubr.bf16.vlgmr.msra.gmra.mrb[0].mxu0 %v3033_v34  ;;  %v3808_v34 = vld [vmem:[%s4893_s1 + $0x228] sm:$0xff]  }
  0x24   :  { %2283 = vmatmul.mubr.bf16.vlgmr.msra.gmra.mrb[0].mxu1 %v3035_v36  ;;  %3372 = vmatpush3.bf16.msra.mxu0 %v3752_v40  ;;  %v3810_v36 = vld [vmem:[%s4893_s1 + $0x270] sm:$0xff]   ;;  %v3814_v40 = vld [vmem:[%s4893_s1 + $0x278] sm:$0xff]  }
  0x25   :  { %3394 = vmatpush3.bf16.msra.mxu1 %v3753_v41  ;;  %3373 = vmatprep.subr.bf16.mxu0 %v3754_v42  ;;  %v3815_v41 = vld [vmem:[%s4893_s1 + $0x2f8] sm:$0xff]  }
  0x26   :  { %3395 = vmatprep.subr.bf16.mxu1 %v3755_v43  ;;  %2322 = vmatprep.mubr.bf16.mxu0 %v3038_v8  ;;  %v3816_v42 = vld [vmem:[%s4893_s1 + $0x238] sm:$0xff]   ;;  %v3844_v8 = vld [vmem:[%s4893_s1 + $0x328] sm:$0xff]  }
  0x27   :  { %2362 = vmatprep.mubr.bf16.mxu1 %v3040_v11  ;;  %v3817_v43 = vld [vmem:[%s4893_s1 + $0x2b8] sm:$0xff]   ;;  %v3847_v11 = vld [vmem:[%s4893_s1 + $0x3f0] sm:$0xff]  }
  0x28   :  { %3374 = vmatpush3.bf16.msra.mxu0 %v3756_v44  ;;  %v31_v44 = vld [vmem:[%s4894_s0 + $0x20] sm:$0xff] }
  0x29   :  { %3396 = vmatpush3.bf16.msra.mxu1 %v3757_v45  ;;  %3375 = vmatprep.subr.bf16.mxu0 %v3758_v46  ;;  %v32_v45 = vld [vmem:[%s4894_s0 + $0x28] sm:$0xff]  ;;  %v3041_v46 = vcombine.low %v31_v44, %v31_v44 }
  0x2a   :  { %3397 = vmatprep.subr.bf16.mxu1 %v3759_v47  ;;  %v3042_v47 = vcombine.high %v31_v44, %v31_v44  ;;  %v3878_v44 = vld [vmem:[%s4893_s1 + $0x468] sm:$0xff]  }
  0x2c   :  { %3376 = vmatpush3.bf16.msra.mxu0 %v3760_v48  ;;  %v3043_v48 = vcombine.low %v32_v45, %v32_v45 }
  0x2d   :  { %3398 = vmatpush3.bf16.msra.mxu1 %v3761_v49  ;;  %3377 = vmatprep.subr.bf16.mxu0 %v3762_v50  ;;  %v3044_v49 = vcombine.high %v32_v45, %v32_v45  ;;  %v3822_v50 = vld [vmem:[%s4893_s1 + $0x340] sm:$0xff]   ;;  %v3879_v45 = vld [vmem:[%s4893_s1 + $0x4e8] sm:$0xff]  }
  0x2e   :  { %3399 = vmatprep.subr.bf16.mxu1 %v3763_v51  ;;  %v3823_v51 = vld [vmem:[%s4893_s1 + $0x3c0] sm:$0xff]  }
  0x30   :  { %3378 = vmatpush3.bf16.msra.mxu0 %v3764_v52  ;;  %v3824_v52 = vld [vmem:[%s4893_s1 + $0x300] sm:$0xff]  }
  0x31   :  { %3400 = vmatpush3.bf16.msra.mxu1 %v3765_v53  ;;  %3379 = vmatprep.subr.bf16.mxu0 %v3766_v54  ;;  %v3825_v53 = vld [vmem:[%s4893_s1 + $0x380] sm:$0xff]   ;;  %v3826_v54 = vld [vmem:[%s4893_s1 + $0x348] sm:$0xff]  }
  0x32   :  { %3401 = vmatprep.subr.bf16.mxu1 %v3767_v55  ;;  %v3827_v55 = vld [vmem:[%s4893_s1 + $0x3c8] sm:$0xff]  }
  0x34   :  { %3380 = vmatpush3.bf16.msra.mxu0 %v3768_v56  ;;  %v3828_v56 = vld [vmem:[%s4893_s1 + $0x308] sm:$0xff]  }
  0x35   :  { %3402 = vmatpush3.bf16.msra.mxu1 %v3769_v57  ;;  %3381 = vmatprep.subr.bf16.mxu0 %v3770_v58  ;;  %v3829_v57 = vld [vmem:[%s4893_s1 + $0x388] sm:$0xff]   ;;  %v3830_v58 = vld [vmem:[%s4893_s1 + $0x350] sm:$0xff]  }
  0x36   :  { %3403 = vmatprep.subr.bf16.mxu1 %v3771_v59  ;;  %v3831_v59 = vld [vmem:[%s4893_s1 + $0x3d0] sm:$0xff]  }
  0x38   :  { %3382 = vmatpush3.bf16.msra.mxu0 %v3772_v60  ;;  %v3832_v60 = vld [vmem:[%s4893_s1 + $0x310] sm:$0xff]  }
  0x39   :  { %3404 = vmatpush3.bf16.msra.mxu1 %v3773_v61  ;;  %3383 = vmatprep.subr.bf16.mxu0 %v3774_v62  ;;  %v3833_v61 = vld [vmem:[%s4893_s1 + $0x390] sm:$0xff]   ;;  %v3834_v62 = vld [vmem:[%s4893_s1 + $0x358] sm:$0xff]  }
  0x3a   :  { %3405 = vmatprep.subr.bf16.mxu1 %v3775_v63  ;;  %v3835_v63 = vld [vmem:[%s4893_s1 + $0x3d8] sm:$0xff]  }
  0x3c   :  { %3384 = vmatpush3.bf16.msra.mxu0 %v3776_v0  ;;  %v3836_v0 = vld [vmem:[%s4893_s1 + $0x318] sm:$0xff]  }
  0x3d   :  { %3406 = vmatpush3.bf16.msra.mxu1 %v3777_v1  ;;  %3385 = vmatprep.subr.bf16.mxu0 %v3778_v2  ;;  %v3837_v1 = vld [vmem:[%s4893_s1 + $0x398] sm:$0xff]   ;;  %v3838_v2 = vld [vmem:[%s4893_s1 + $0x360] sm:$0xff]  }
  0x3e   :  { %3407 = vmatprep.subr.bf16.mxu1 %v3779_v3  ;;  %v3839_v3 = vld [vmem:[%s4893_s1 + $0x3e0] sm:$0xff]  }
  0x40   :  { %3386 = vmatpush3.bf16.msra.mxu0 %v3780_v4  ;;  %v3840_v4 = vld [vmem:[%s4893_s1 + $0x320] sm:$0xff]  }
  0x41   :  { %3408 = vmatpush3.bf16.msra.mxu1 %v3781_v5  ;;  %3415 = vmatprep.subr.bf16.mxu0 %v3786_v12  ;;  %v3841_v5 = vld [vmem:[%s4893_s1 + $0x3a0] sm:$0xff]   ;;  %v3848_v12 = vld [vmem:[%s4893_s1 + $0x330] sm:$0xff]  }
  0x42   :  { %3437 = vmatprep.subr.bf16.mxu1 %v3787_v13  ;;  %v3849_v13 = vld [vmem:[%s4893_s1 + $0x3b0] sm:$0xff]  }
  0x43   :  { %2323 = vmatmul.mubr.bf16.vlgmr.msra.gmra.mrb[4].mxu0 %v3037_v7  ;;  %v3843_v7 = vld [vmem:[%s4893_s1 + $0x3e8] sm:$0xff]  }
  0x44   :  { %2363 = vmatmul.mubr.bf16.vlgmr.msra.gmra.mrb[4].mxu1 %v3039_v10  ;;  %3416 = vmatpush3.bf16.msra.mxu0 %v3788_v14  ;;  %v3846_v10 = vld [vmem:[%s4893_s1 + $0x370] sm:$0xff]   ;;  %v3850_v14 = vld [vmem:[%s4893_s1 + $0x378] sm:$0xff]  }
  0x45   :  { %3438 = vmatpush3.bf16.msra.mxu1 %v3789_v15  ;;  %3417 = vmatprep.subr.bf16.mxu0 %v3790_v16  ;;  %v3851_v15 = vld [vmem:[%s4893_s1 + $0x3f8] sm:$0xff]  }
  0x46   :  { %3439 = vmatprep.subr.bf16.mxu1 %v3791_v17  ;;  %2402 = vmatprep.mubr.bf16.mxu0 %v3042_v47  ;;  %v3852_v16 = vld [vmem:[%s4893_s1 + $0x338] sm:$0xff]   ;;  %v3881_v47 = vld [vmem:[%s4893_s1 + $0x4a8] sm:$0xff]  }
  0x47   :  { %2442 = vmatprep.mubr.bf16.mxu1 %v3044_v49  ;;  %v3853_v17 = vld [vmem:[%s4893_s1 + $0x3b8] sm:$0xff]   ;;  %v3883_v49 = vld [vmem:[%s4893_s1 + $0x4f0] sm:$0xff]  }
  0x48   :  { %3418 = vmatpush3.bf16.msra.mxu0 %v3792_v18  ;;  %v33_v18 = vld [vmem:[%s4894_s0 + $0x30] sm:$0xff] }
  0x49   :  { %3440 = vmatpush3.bf16.msra.mxu1 %v3793_v19  ;;  %3419 = vmatprep.subr.bf16.mxu0 %v3794_v20  ;;  %v34_v19 = vld [vmem:[%s4894_s0 + $0x38] sm:$0xff]  ;;  %v3045_v20 = vcombine.low %v33_v18, %v33_v18 }
  0x4a   :  { %3441 = vmatprep.subr.bf16.mxu1 %v3795_v21  ;;  %v3046_v21 = vcombine.high %v33_v18, %v33_v18  ;;  %v3914_v18 = vld [vmem:[%s4893_s1 + $0x568] sm:$0xff]  }
  0x4c   :  { %3420 = vmatpush3.bf16.msra.mxu0 %v3796_v22  ;;  %v3047_v22 = vcombine.low %v34_v19, %v34_v19 }
  0x4d   :  { %3442 = vmatpush3.bf16.msra.mxu1 %v3797_v23  ;;  %3421 = vmatprep.subr.bf16.mxu0 %v3798_v24  ;;  %v3858_v23 = vld [vmem:[%s4893_s1 + $0x440] sm:$0xff]   ;;  %v3048_v24 = vcombine.high %v34_v19, %v34_v19  ;;  %v3915_v19 = vld [vmem:[%s4893_s1 + $0x5e8] sm:$0xff]  }
  0x4e   :  { %3443 = vmatprep.subr.bf16.mxu1 %v3799_v25  ;;  %v3859_v25 = vld [vmem:[%s4893_s1 + $0x4c0] sm:$0xff]  }
  0x50   :  { %3422 = vmatpush3.bf16.msra.mxu0 %v3800_v26  ;;  %v3860_v26 = vld [vmem:[%s4893_s1 + $0x400] sm:$0xff]  }
  0x51   :  { %3444 = vmatpush3.bf16.msra.mxu1 %v3801_v27  ;;  %3423 = vmatprep.subr.bf16.mxu0 %v3802_v28  ;;  %v3861_v27 = vld [vmem:[%s4893_s1 + $0x480] sm:$0xff]   ;;  %v3862_v28 = vld [vmem:[%s4893_s1 + $0x448] sm:$0xff]  }
  0x52   :  { %3445 = vmatprep.subr.bf16.mxu1 %v3803_v29  ;;  %v3863_v29 = vld [vmem:[%s4893_s1 + $0x4c8] sm:$0xff]  }
  0x54   :  { %3424 = vmatpush3.bf16.msra.mxu0 %v3804_v30  ;;  %v3864_v30 = vld [vmem:[%s4893_s1 + $0x408] sm:$0xff]  }
  0x55   :  { %3446 = vmatpush3.bf16.msra.mxu1 %v3805_v31  ;;  %3425 = vmatprep.subr.bf16.mxu0 %v3806_v32  ;;  %v3865_v31 = vld [vmem:[%s4893_s1 + $0x488] sm:$0xff]   ;;  %v3866_v32 = vld [vmem:[%s4893_s1 + $0x450] sm:$0xff]  }
  0x56   :  { %3447 = vmatprep.subr.bf16.mxu1 %v3807_v33  ;;  %v3867_v33 = vld [vmem:[%s4893_s1 + $0x4d0] sm:$0xff]  }
  0x58   :  { %3426 = vmatpush3.bf16.msra.mxu0 %v3808_v34  ;;  %v3868_v34 = vld [vmem:[%s4893_s1 + $0x410] sm:$0xff]  }
  0x59   :  { %3448 = vmatpush3.bf16.msra.mxu1 %v3809_v35  ;;  %3427 = vmatprep.subr.bf16.mxu0 %v3810_v36  ;;  %v3869_v35 = vld [vmem:[%s4893_s1 + $0x490] sm:$0xff]   ;;  %v3870_v36 = vld [vmem:[%s4893_s1 + $0x458] sm:$0xff]  }
  0x5a   :  { %3449 = vmatprep.subr.bf16.mxu1 %v3811_v37  ;;  %v3871_v37 = vld [vmem:[%s4893_s1 + $0x4d8] sm:$0xff]  }
  0x5c   :  { %3428 = vmatpush3.bf16.msra.mxu0 %v3812_v38  ;;  %v3872_v38 = vld [vmem:[%s4893_s1 + $0x418] sm:$0xff]  }
  0x5d   :  { %3450 = vmatpush3.bf16.msra.mxu1 %v3813_v39  ;;  %3429 = vmatprep.subr.bf16.mxu0 %v3814_v40  ;;  %v3873_v39 = vld [vmem:[%s4893_s1 + $0x498] sm:$0xff]   ;;  %v3874_v40 = vld [vmem:[%s4893_s1 + $0x460] sm:$0xff]  }
  0x5e   :  { %3451 = vmatprep.subr.bf16.mxu1 %v3815_v41  ;;  %v3875_v41 = vld [vmem:[%s4893_s1 + $0x4e0] sm:$0xff]  }
  0x60   :  { %3430 = vmatpush3.bf16.msra.mxu0 %v3816_v42  ;;  %v3876_v42 = vld [vmem:[%s4893_s1 + $0x420] sm:$0xff]  }
  0x61   :  { %3452 = vmatpush3.bf16.msra.mxu1 %v3817_v43  ;;  %3459 = vmatprep.subr.bf16.mxu0 %v3822_v50  ;;  %v3877_v43 = vld [vmem:[%s4893_s1 + $0x4a0] sm:$0xff]   ;;  %v3884_v50 = vld [vmem:[%s4893_s1 + $0x430] sm:$0xff]  }
  0x62   :  { %3481 = vmatprep.subr.bf16.mxu1 %v3823_v51  ;;  %v3885_v51 = vld [vmem:[%s4893_s1 + $0x4b0] sm:$0xff]  }
  0x63   :  { %2403 = vmatmul.mubr.bf16.vlgmr.msra.gmra.mrb[8].mxu0 %v3041_v46  ;;  %v3880_v46 = vld [vmem:[%s4893_s1 + $0x428] sm:$0xff]  }
  0x64   :  { %2443 = vmatmul.mubr.bf16.vlgmr.msra.gmra.mrb[8].mxu1 %v3043_v48  ;;  %3460 = vmatpush3.bf16.msra.mxu0 %v3824_v52  ;;  %v3882_v48 = vld [vmem:[%s4893_s1 + $0x470] sm:$0xff]   ;;  %v3886_v52 = vld [vmem:[%s4893_s1 + $0x478] sm:$0xff]  }
  0x65   :  { %3482 = vmatpush3.bf16.msra.mxu1 %v3825_v53  ;;  %3461 = vmatprep.subr.bf16.mxu0 %v3826_v54  ;;  %v3887_v53 = vld [vmem:[%s4893_s1 + $0x4f8] sm:$0xff]  }
  0x66   :  { %3483 = vmatprep.subr.bf16.mxu1 %v3827_v55  ;;  %2482 = vmatprep.mubr.bf16.mxu0 %v3046_v21  ;;  %v3888_v54 = vld [vmem:[%s4893_s1 + $0x438] sm:$0xff]   ;;  %v3917_v21 = vld [vmem:[%s4893_s1 + $0x5a8] sm:$0xff]  }
  0x67   :  { %2522 = vmatprep.mubr.bf16.mxu1 %v3048_v24  ;;  %v3889_v55 = vld [vmem:[%s4893_s1 + $0x4b8] sm:$0xff]   ;;  %v3920_v24 = vld [vmem:[%s4893_s1 + $0x530] sm:$0xff]  }
  0x68   :  { %3462 = vmatpush3.bf16.msra.mxu0 %v3828_v56  ;;  %v35_v56 = vld [vmem:[%s4894_s0 + $0x40] sm:$0xff] }
  0x69   :  { %3484 = vmatpush3.bf16.msra.mxu1 %v3829_v57  ;;  %3463 = vmatprep.subr.bf16.mxu0 %v3830_v58  ;;  %v3049_v57 = vcombine.low %v35_v56, %v35_v56  ;;  %v3050_v58 = vcombine.high %v35_v56, %v35_v56  ;;  %v3950_v56 = vld [vmem:[%s4893_s1 + $0x668] sm:$0xff]  }
  0x6a   :  { %3485 = vmatprep.subr.bf16.mxu1 %v3831_v59  ;;  %v36_v59 = vld [vmem:[%s4894_s0 + $0x48] sm:$0xff] }
  0x6c   :  { %3464 = vmatpush3.bf16.msra.mxu0 %v3832_v60  ;;  %v3051_v60 = vcombine.low %v36_v59, %v36_v59 }
  0x6d   :  { %3486 = vmatpush3.bf16.msra.mxu1 %v3833_v61  ;;  %3465 = vmatprep.subr.bf16.mxu0 %v3834_v62  ;;  %v3052_v61 = vcombine.high %v36_v59, %v36_v59  ;;  %v3894_v62 = vld [vmem:[%s4893_s1 + $0x540] sm:$0xff]   ;;  %v3953_v59 = vld [vmem:[%s4893_s1 + $0x6a8] sm:$0xff]  }
  0x6e   :  { %3487 = vmatprep.subr.bf16.mxu1 %v3835_v63  ;;  %v3895_v63 = vld [vmem:[%s4893_s1 + $0x5c0] sm:$0xff]  }
  0x70   :  { %3466 = vmatpush3.bf16.msra.mxu0 %v3836_v0  ;;  %v3896_v0 = vld [vmem:[%s4893_s1 + $0x500] sm:$0xff]  }
  0x71   :  { %3488 = vmatpush3.bf16.msra.mxu1 %v3837_v1  ;;  %3467 = vmatprep.subr.bf16.mxu0 %v3838_v2  ;;  %v3897_v1 = vld [vmem:[%s4893_s1 + $0x580] sm:$0xff]   ;;  %v3898_v2 = vld [vmem:[%s4893_s1 + $0x548] sm:$0xff]  }
  0x72   :  { %3489 = vmatprep.subr.bf16.mxu1 %v3839_v3  ;;  %v3899_v3 = vld [vmem:[%s4893_s1 + $0x5c8] sm:$0xff]  }
  0x74   :  { %3468 = vmatpush3.bf16.msra.mxu0 %v3840_v4  ;;  %v3900_v4 = vld [vmem:[%s4893_s1 + $0x508] sm:$0xff]  }
  0x75   :  { %3490 = vmatpush3.bf16.msra.mxu1 %v3841_v5  ;;  %3469 = vmatprep.subr.bf16.mxu0 %v3842_v6  ;;  %v3901_v5 = vld [vmem:[%s4893_s1 + $0x588] sm:$0xff]   ;;  %v3902_v6 = vld [vmem:[%s4893_s1 + $0x550] sm:$0xff]  }
  0x76   :  { %3491 = vmatprep.subr.bf16.mxu1 %v3843_v7  ;;  %v3903_v7 = vld [vmem:[%s4893_s1 + $0x5d0] sm:$0xff]  }
  0x78   :  { %3470 = vmatpush3.bf16.msra.mxu0 %v3844_v8  ;;  %v3904_v8 = vld [vmem:[%s4893_s1 + $0x510] sm:$0xff]  }
  0x79   :  { %3492 = vmatpush3.bf16.msra.mxu1 %v3845_v9  ;;  %3471 = vmatprep.subr.bf16.mxu0 %v3846_v10  ;;  %v3905_v9 = vld [vmem:[%s4893_s1 + $0x590] sm:$0xff]   ;;  %v3906_v10 = vld [vmem:[%s4893_s1 + $0x558] sm:$0xff]  }
  0x7a   :  { %3493 = vmatprep.subr.bf16.mxu1 %v3847_v11  ;;  %v3907_v11 = vld [vmem:[%s4893_s1 + $0x5d8] sm:$0xff]  }
  0x7c   :  { %3472 = vmatpush3.bf16.msra.mxu0 %v3848_v12  ;;  %v3908_v12 = vld [vmem:[%s4893_s1 + $0x518] sm:$0xff]  }
  0x7d   :  { %3494 = vmatpush3.bf16.msra.mxu1 %v3849_v13  ;;  %3473 = vmatprep.subr.bf16.mxu0 %v3850_v14  ;;  %v3909_v13 = vld [vmem:[%s4893_s1 + $0x598] sm:$0xff]   ;;  %v3910_v14 = vld [vmem:[%s4893_s1 + $0x560] sm:$0xff]  }
  0x7e   :  { %3495 = vmatprep.subr.bf16.mxu1 %v3851_v15  ;;  %v3911_v15 = vld [vmem:[%s4893_s1 + $0x5e0] sm:$0xff]  }
  0x80   :  { %3474 = vmatpush3.bf16.msra.mxu0 %v3852_v16  ;;  %v3912_v16 = vld [vmem:[%s4893_s1 + $0x520] sm:$0xff]  }
  0x81   :  { %3496 = vmatpush3.bf16.msra.mxu1 %v3853_v17  ;;  %3503 = vmatprep.subr.bf16.mxu0 %v3858_v23  ;;  %v3913_v17 = vld [vmem:[%s4893_s1 + $0x5a0] sm:$0xff]   ;;  %v3919_v23 = vld [vmem:[%s4893_s1 + $0x5f0] sm:$0xff]  }
  0x82   :  { %3525 = vmatprep.subr.bf16.mxu1 %v3859_v25  ;;  %v3921_v25 = vld [vmem:[%s4893_s1 + $0x5b0] sm:$0xff]  }
  0x83   :  { %2483 = vmatmul.mubr.bf16.vlgmr.msra.gmra.mrb[12].mxu0 %v3045_v20  ;;  %v3916_v20 = vld [vmem:[%s4893_s1 + $0x528] sm:$0xff]  }
  0x84   :  { %2523 = vmatmul.mubr.bf16.vlgmr.msra.gmra.mrb[12].mxu1 %v3047_v22  ;;  %3504 = vmatpush3.bf16.msra.mxu0 %v3860_v26  ;;  %v3918_v22 = vld [vmem:[%s4893_s1 + $0x570] sm:$0xff]   ;;  %v3922_v26 = vld [vmem:[%s4893_s1 + $0x578] sm:$0xff]  }
  0x85   :  { %3526 = vmatpush3.bf16.msra.mxu1 %v3861_v27  ;;  %3505 = vmatprep.subr.bf16.mxu0 %v3862_v28  ;;  %v3923_v27 = vld [vmem:[%s4893_s1 + $0x5f8] sm:$0xff]  }
  0x86   :  { %3527 = vmatprep.subr.bf16.mxu1 %v3863_v29  ;;  %2562 = vmatprep.mubr.bf16.mxu0 %v3050_v58  ;;  %v3924_v28 = vld [vmem:[%s4893_s1 + $0x538] sm:$0xff]   ;;  %v3952_v58 = vld [vmem:[%s4893_s1 + $0x628] sm:$0xff]  }
  0x87   :  { %2602 = vmatprep.mubr.bf16.mxu1 %v3052_v61  ;;  %v3925_v29 = vld [vmem:[%s4893_s1 + $0x5b8] sm:$0xff]   ;;  %v3955_v61 = vld [vmem:[%s4893_s1 + $0x6f0] sm:$0xff]  }
  0x88   :  { %3506 = vmatpush3.bf16.msra.mxu0 %v3864_v30  ;;  %v37_v30 = vld [vmem:[%s4894_s0 + $0x50] sm:$0xff] }
  0x89   :  { %3528 = vmatpush3.bf16.msra.mxu1 %v3865_v31  ;;  %3507 = vmatprep.subr.bf16.mxu0 %v3866_v32  ;;  %v38_v31 = vld [vmem:[%s4894_s0 + $0x58] sm:$0xff]  ;;  %v3053_v32 = vcombine.low %v37_v30, %v37_v30 }
  0x8a   :  { %3529 = vmatprep.subr.bf16.mxu1 %v3867_v33  ;;  %v3054_v33 = vcombine.high %v37_v30, %v37_v30  ;;  %v3985_v30 = vld [vmem:[%s4893_s1 + $0x7a0] sm:$0xff]  }
  0x8c   :  { %3508 = vmatpush3.bf16.msra.mxu0 %v3868_v34  ;;  %v3055_v34 = vcombine.low %v38_v31, %v38_v31 }
  0x8d   :  { %3530 = vmatpush3.bf16.msra.mxu1 %v3869_v35  ;;  %3509 = vmatprep.subr.bf16.mxu0 %v3870_v36  ;;  %v3056_v35 = vcombine.high %v38_v31, %v38_v31  ;;  %v3930_v36 = vld [vmem:[%s4893_s1 + $0x640] sm:$0xff]  }
  0x8e   :  { %3531 = vmatprep.subr.bf16.mxu1 %v3871_v37  ;;  %v3931_v37 = vld [vmem:[%s4893_s1 + $0x6c0] sm:$0xff]  }
  0x90   :  { %3510 = vmatpush3.bf16.msra.mxu0 %v3872_v38  ;;  %v3932_v38 = vld [vmem:[%s4893_s1 + $0x600] sm:$0xff]  }
  0x91   :  { %3532 = vmatpush3.bf16.msra.mxu1 %v3873_v39  ;;  %3511 = vmatprep.subr.bf16.mxu0 %v3874_v40  ;;  %v3933_v39 = vld [vmem:[%s4893_s1 + $0x680] sm:$0xff]   ;;  %v3934_v40 = vld [vmem:[%s4893_s1 + $0x648] sm:$0xff]  }
  0x92   :  { %3533 = vmatprep.subr.bf16.mxu1 %v3875_v41  ;;  %v3935_v41 = vld [vmem:[%s4893_s1 + $0x6c8] sm:$0xff]  }
  0x94   :  { %3512 = vmatpush3.bf16.msra.mxu0 %v3876_v42  ;;  %v3936_v42 = vld [vmem:[%s4893_s1 + $0x608] sm:$0xff]  }
  0x95   :  { %3534 = vmatpush3.bf16.msra.mxu1 %v3877_v43  ;;  %3513 = vmatprep.subr.bf16.mxu0 %v3878_v44  ;;  %v3937_v43 = vld [vmem:[%s4893_s1 + $0x688] sm:$0xff]   ;;  %v3938_v44 = vld [vmem:[%s4893_s1 + $0x650] sm:$0xff]  }
  0x96   :  { %3535 = vmatprep.subr.bf16.mxu1 %v3879_v45  ;;  %v3939_v45 = vld [vmem:[%s4893_s1 + $0x6d0] sm:$0xff]  }
  0x98   :  { %3514 = vmatpush3.bf16.msra.mxu0 %v3880_v46  ;;  %v3940_v46 = vld [vmem:[%s4893_s1 + $0x610] sm:$0xff]  }
  0x99   :  { %3536 = vmatpush3.bf16.msra.mxu1 %v3881_v47  ;;  %3515 = vmatprep.subr.bf16.mxu0 %v3882_v48  ;;  %v3941_v47 = vld [vmem:[%s4893_s1 + $0x690] sm:$0xff]   ;;  %v3942_v48 = vld [vmem:[%s4893_s1 + $0x658] sm:$0xff]  }
  0x9a   :  { %3537 = vmatprep.subr.bf16.mxu1 %v3883_v49  ;;  %v3943_v49 = vld [vmem:[%s4893_s1 + $0x6d8] sm:$0xff]  }
  0x9c   :  { %3516 = vmatpush3.bf16.msra.mxu0 %v3884_v50  ;;  %v3944_v50 = vld [vmem:[%s4893_s1 + $0x618] sm:$0xff]  }
  0x9d   :  { %3538 = vmatpush3.bf16.msra.mxu1 %v3885_v51  ;;  %3517 = vmatprep.subr.bf16.mxu0 %v3886_v52  ;;  %v3945_v51 = vld [vmem:[%s4893_s1 + $0x698] sm:$0xff]   ;;  %v3946_v52 = vld [vmem:[%s4893_s1 + $0x660] sm:$0xff]  }
  0x9e   :  { %3539 = vmatprep.subr.bf16.mxu1 %v3887_v53  ;;  %v3947_v53 = vld [vmem:[%s4893_s1 + $0x6e0] sm:$0xff]  }
  0xa0   :  { %3518 = vmatpush3.bf16.msra.mxu0 %v3888_v54  ;;  %v3948_v54 = vld [vmem:[%s4893_s1 + $0x620] sm:$0xff]  }
  0xa1   :  { %3540 = vmatpush3.bf16.msra.mxu1 %v3889_v55  ;;  %3547 = vmatprep.subr.bf16.mxu0 %v3894_v62  ;;  %v3949_v55 = vld [vmem:[%s4893_s1 + $0x6a0] sm:$0xff]   ;;  %v3956_v62 = vld [vmem:[%s4893_s1 + $0x630] sm:$0xff]  }
  0xa2   :  { %3569 = vmatprep.subr.bf16.mxu1 %v3895_v63  ;;  %v3957_v63 = vld [vmem:[%s4893_s1 + $0x6b0] sm:$0xff]  }
  0xa3   :  { %2563 = vmatmul.mubr.bf16.vlgmr.msra.gmra.mrb[16].mxu0 %v3049_v57  ;;  %v3951_v57 = vld [vmem:[%s4893_s1 + $0x6e8] sm:$0xff]  }
  0xa4   :  { %2603 = vmatmul.mubr.bf16.vlgmr.msra.gmra.mrb[16].mxu1 %v3051_v60  ;;  %3548 = vmatpush3.bf16.msra.mxu0 %v3896_v0  ;;  %v3954_v60 = vld [vmem:[%s4893_s1 + $0x670] sm:$0xff]   ;;  %v3958_v0 = vld [vmem:[%s4893_s1 + $0x678] sm:$0xff]  }
  0xa5   :  { %3570 = vmatpush3.bf16.msra.mxu1 %v3897_v1  ;;  %3549 = vmatprep.subr.bf16.mxu0 %v3898_v2  ;;  %v3959_v1 = vld [vmem:[%s4893_s1 + $0x6f8] sm:$0xff]  }
  0xa6   :  { %3571 = vmatprep.subr.bf16.mxu1 %v3899_v3  ;;  %2642 = vmatprep.mubr.bf16.mxu0 %v3054_v33  ;;  %v3960_v2 = vld [vmem:[%s4893_s1 + $0x638] sm:$0xff]  }
  0xa7   :  { %2682 = vmatprep.mubr.bf16.mxu1 %v3056_v35  ;;  %v3961_v3 = vld [vmem:[%s4893_s1 + $0x6b8] sm:$0xff]  }
  0xa8   :  { %3550 = vmatpush3.bf16.msra.mxu0 %v3900_v4  ;;  %v39_v4 = vld [vmem:[%s4894_s0 + $0x60] sm:$0xff] }
  0xa9   :  { %3572 = vmatpush3.bf16.msra.mxu1 %v3901_v5  ;;  %3551 = vmatprep.subr.bf16.mxu0 %v3902_v6  ;;  %v40_v5 = vld [vmem:[%s4894_s0 + $0x68] sm:$0xff]  ;;  %v3057_v6 = vcombine.low %v39_v4, %v39_v4 }
  0xaa   :  { %3573 = vmatprep.subr.bf16.mxu1 %v3903_v7  ;;  %v3058_v7 = vcombine.high %v39_v4, %v39_v4 }
  0xac   :  { %3552 = vmatpush3.bf16.msra.mxu0 %v3904_v8  ;;  %v3059_v8 = vcombine.low %v40_v5, %v40_v5 }
  0xad   :  { %3574 = vmatpush3.bf16.msra.mxu1 %v3905_v9  ;;  %3553 = vmatprep.subr.bf16.mxu0 %v3906_v10  ;;  %v3966_v9 = vld [vmem:[%s4893_s1 + $0x740] sm:$0xff]   ;;  %v3060_v10 = vcombine.high %v40_v5, %v40_v5 }
  0xae   :  { %3575 = vmatprep.subr.bf16.mxu1 %v3907_v11  ;;  %v3967_v11 = vld [vmem:[%s4893_s1 + $0x7c0] sm:$0xff]  }
  0xb0   :  { %3554 = vmatpush3.bf16.msra.mxu0 %v3908_v12  ;;  %v3968_v12 = vld [vmem:[%s4893_s1 + $0x700] sm:$0xff]  }
  0xb1   :  { %3576 = vmatpush3.bf16.msra.mxu1 %v3909_v13  ;;  %3555 = vmatprep.subr.bf16.mxu0 %v3910_v14  ;;  %v3969_v13 = vld [vmem:[%s4893_s1 + $0x780] sm:$0xff]   ;;  %v3970_v14 = vld [vmem:[%s4893_s1 + $0x748] sm:$0xff]  }
  0xb2   :  { %3577 = vmatprep.subr.bf16.mxu1 %v3911_v15  ;;  %v3971_v15 = vld [vmem:[%s4893_s1 + $0x7c8] sm:$0xff]  }
  0xb4   :  { %3556 = vmatpush3.bf16.msra.mxu0 %v3912_v16  ;;  %v3972_v16 = vld [vmem:[%s4893_s1 + $0x708] sm:$0xff]  }
  0xb5   :  { %3578 = vmatpush3.bf16.msra.mxu1 %v3913_v17  ;;  %3557 = vmatprep.subr.bf16.mxu0 %v3914_v18  ;;  %v3973_v17 = vld [vmem:[%s4893_s1 + $0x788] sm:$0xff]   ;;  %v3974_v18 = vld [vmem:[%s4893_s1 + $0x750] sm:$0xff]  }
  0xb6   :  { %3579 = vmatprep.subr.bf16.mxu1 %v3915_v19  ;;  %v3975_v19 = vld [vmem:[%s4893_s1 + $0x7d0] sm:$0xff]  }
  0xb8   :  { %3558 = vmatpush3.bf16.msra.mxu0 %v3916_v20  ;;  %v3976_v20 = vld [vmem:[%s4893_s1 + $0x710] sm:$0xff]  }
  0xb9   :  { %3580 = vmatpush3.bf16.msra.mxu1 %v3917_v21  ;;  %3559 = vmatprep.subr.bf16.mxu0 %v3918_v22  ;;  %v3977_v21 = vld [vmem:[%s4893_s1 + $0x790] sm:$0xff]   ;;  %v3978_v22 = vld [vmem:[%s4893_s1 + $0x758] sm:$0xff]  }
  0xba   :  { %3581 = vmatprep.subr.bf16.mxu1 %v3919_v23  ;;  %v3979_v23 = vld [vmem:[%s4893_s1 + $0x7d8] sm:$0xff]  }
  0xbc   :  { %3560 = vmatpush3.bf16.msra.mxu0 %v3920_v24  ;;  %v3980_v24 = vld [vmem:[%s4893_s1 + $0x718] sm:$0xff]  }
  0xbd   :  { %3582 = vmatpush3.bf16.msra.mxu1 %v3921_v25  ;;  %3561 = vmatprep.subr.bf16.mxu0 %v3922_v26  ;;  %v3981_v25 = vld [vmem:[%s4893_s1 + $0x798] sm:$0xff]   ;;  %v3982_v26 = vld [vmem:[%s4893_s1 + $0x760] sm:$0xff]  }
  0xbe   :  { %3583 = vmatprep.subr.bf16.mxu1 %v3923_v27  ;;  %v3983_v27 = vld [vmem:[%s4893_s1 + $0x7e0] sm:$0xff]  }
  0xc0   :  { %3562 = vmatpush3.bf16.msra.mxu0 %v3924_v28  ;;  %v3984_v28 = vld [vmem:[%s4893_s1 + $0x720] sm:$0xff]  }
  0xc1   :  { %3584 = vmatpush3.bf16.msra.mxu1 %v3925_v29  ;;  %3591 = vmatprep.subr.bf16.mxu0 %v3930_v36 }
  0xc2   :  { %3613 = vmatprep.subr.bf16.mxu1 %v3931_v37  ;;  %v3986_v37 = vld [vmem:[%s4893_s1 + $0x768] sm:$0xff]  }
  0xc3   :  { %2643 = vmatmul.mubr.bf16.vlgmr.msra.gmra.mrb[20].mxu0 %v3053_v32  ;;  %v3032_v32 = vld [vmem:[%s4895_s2] ss:$0 sm:$0xff] }
  0xc4   :  { %2683 = vmatmul.mubr.bf16.vlgmr.msra.gmra.mrb[20].mxu1 %v3055_v34  ;;  %3592 = vmatpush3.bf16.msra.mxu0 %v3932_v38 }
  0xc5   :  { %3614 = vmatpush3.bf16.msra.mxu1 %v3933_v39  ;;  %3593 = vmatprep.subr.bf16.mxu0 %v3934_v40  ;;  %v3987_v39 = vld [vmem:[%s4893_s1 + $0x7e8] sm:$0xff]  }
  0xc6   :  { %3615 = vmatprep.subr.bf16.mxu1 %v3935_v41  ;;  %2722 = vmatprep.mubr.bf16.mxu0 %v3058_v7 }
  0xc7   :  { %2762 = vmatprep.mubr.bf16.mxu1 %v3060_v10 }
  0xc8   :  { %3594 = vmatpush3.bf16.msra.mxu0 %v3936_v42  ;;  %v3988_v42 = vld [vmem:[%s4893_s1 + $0x728] sm:$0xff]  }
  0xc9   :  { %3616 = vmatpush3.bf16.msra.mxu1 %v3937_v43  ;;  %3595 = vmatprep.subr.bf16.mxu0 %v3938_v44  ;;  %v3989_v44 = vld [vmem:[%s4893_s1 + $0x7a8] sm:$0xff]  }
  0xca   :  { %3617 = vmatprep.subr.bf16.mxu1 %v3939_v45 }
  0xcc   :  { %3596 = vmatpush3.bf16.msra.mxu0 %v3940_v46 }
  0xcd   :  { %3618 = vmatpush3.bf16.msra.mxu1 %v3941_v47  ;;  %3597 = vmatprep.subr.bf16.mxu0 %v3942_v48  ;;  %v3990_v47 = vld [vmem:[%s4893_s1 + $0x770] sm:$0xff]  }
  0xce   :  { %3619 = vmatprep.subr.bf16.mxu1 %v3943_v49  ;;  %v3991_v48 = vld [vmem:[%s4893_s1 + $0x7f0] sm:$0xff]  }
  0xcf   :  { %v3992_v49 = vld [vmem:[%s4893_s1 + $0x730] sm:$0xff]  }
  0xd0   :  { %3598 = vmatpush3.bf16.msra.mxu0 %v3944_v50  ;;  %v3993_v50 = vld [vmem:[%s4893_s1 + $0x7b0] sm:$0xff]  }
  0xd1   :  { %3620 = vmatpush3.bf16.msra.mxu1 %v3945_v51  ;;  %3599 = vmatprep.subr.bf16.mxu0 %v3946_v52  ;;  %v3994_v51 = vld [vmem:[%s4893_s1 + $0x778] sm:$0xff]  }
  0xd2   :  { %3621 = vmatprep.subr.bf16.mxu1 %v3947_v53  ;;  %v3995_v52 = vld [vmem:[%s4893_s1 + $0x7f8] sm:$0xff]  }
  0xd3   :  { %v3996_v53 = vld [vmem:[%s4893_s1 + $0x738] sm:$0xff]  }
  0xd4   :  { %3600 = vmatpush3.bf16.msra.mxu0 %v3948_v54  ;;  %v3997_v54 = vld [vmem:[%s4893_s1 + $0x7b8] sm:$0xff]  }
  0xd5   :  { %3622 = vmatpush3.bf16.msra.mxu1 %v3949_v55  ;;  %3601 = vmatprep.subr.bf16.mxu0 %v3950_v56  ;;  %v41_v55 = vld [vmem:[%s4894_s0 + $0x70] sm:$0xff]  ;;  %v42_v56 = vld [vmem:[%s4894_s0 + $0x78] sm:$0xff] }
  0xd6   :  { %3623 = vmatprep.subr.bf16.mxu1 %v3951_v57  ;;  %v3061_v57 = vcombine.low %v41_v55, %v41_v55 }
  0xd8   :  { %3602 = vmatpush3.bf16.msra.mxu0 %v3952_v58  ;;  %v3062_v58 = vcombine.high %v41_v55, %v41_v55 }
  0xd9   :  { %3624 = vmatpush3.bf16.msra.mxu1 %v3953_v59  ;;  %3603 = vmatprep.subr.bf16.mxu0 %v3954_v60  ;;  %v3063_v59 = vcombine.low %v42_v56, %v42_v56  ;;  %v3064_v60 = vcombine.high %v42_v56, %v42_v56 }
  0xda   :  { %3625 = vmatprep.subr.bf16.mxu1 %v3955_v61 }
  0xdc   :  { %3604 = vmatpush3.bf16.msra.mxu0 %v3956_v62 }
  0xdd   :  { %3626 = vmatpush3.bf16.msra.mxu1 %v3957_v63  ;;  %3605 = vmatprep.subr.bf16.mxu0 %v3958_v0 }
  0xde   :  { %3627 = vmatprep.subr.bf16.mxu1 %v3959_v1 }
  0xe0   :  { %3606 = vmatpush3.bf16.msra.mxu0 %v3960_v2 }
  0xe1   :  { %3628 = vmatpush3.bf16.msra.mxu1 %v3961_v3  ;;  %3635 = vmatprep.subr.bf16.mxu0 %v3966_v9 }
  0xe2   :  { %3657 = vmatprep.subr.bf16.mxu1 %v3967_v11 }
  0xe3   :  { %2723 = vmatmul.mubr.bf16.vlgmr.msra.gmra.mrb[24].mxu0 %v3057_v6 }
  0xe4   :  { %2763 = vmatmul.mubr.bf16.vlgmr.msra.gmra.mrb[24].mxu1 %v3059_v8  ;;  %3636 = vmatpush3.bf16.msra.mxu0 %v3968_v12 }
  0xe5   :  { %3658 = vmatpush3.bf16.msra.mxu1 %v3969_v13  ;;  %3637 = vmatprep.subr.bf16.mxu0 %v3970_v14 }
  0xe6   :  { %3659 = vmatprep.subr.bf16.mxu1 %v3971_v15  ;;  %2802 = vmatprep.mubr.bf16.mxu0 %v3062_v58 }
  0xe7   :  { %2842 = vmatprep.mubr.bf16.mxu1 %v3064_v60 }
  0xe8   :  { %3638 = vmatpush3.bf16.msra.mxu0 %v3972_v16 }
  0xe9   :  { %3660 = vmatpush3.bf16.msra.mxu1 %v3973_v17  ;;  %3639 = vmatprep.subr.bf16.mxu0 %v3974_v18 }
  0xea   :  { %3661 = vmatprep.subr.bf16.mxu1 %v3975_v19 }
  0xec   :  { %3640 = vmatpush3.bf16.msra.mxu0 %v3976_v20 }
  0xed   :  { %3662 = vmatpush3.bf16.msra.mxu1 %v3977_v21  ;;  %3641 = vmatprep.subr.bf16.mxu0 %v3978_v22 }
  0xee   :  { %3663 = vmatprep.subr.bf16.mxu1 %v3979_v23 }
  0xf0   :  { %3642 = vmatpush3.bf16.msra.mxu0 %v3980_v24 }
  0xf1   :  { %3664 = vmatpush3.bf16.msra.mxu1 %v3981_v25  ;;  %3643 = vmatprep.subr.bf16.mxu0 %v3982_v26 }
  0xf2   :  { %3665 = vmatprep.subr.bf16.mxu1 %v3983_v27 }
  0xf4   :  { %3644 = vmatpush3.bf16.msra.mxu0 %v3984_v28 }
  0xf5   :  { %3666 = vmatpush3.bf16.msra.mxu1 %v3985_v30  ;;  %3645 = vmatprep.subr.bf16.mxu0 %v3986_v37  ;;  %v2853_v37 = vld [vmem:[%s4896_s3 + $0x10] sm:$0xf] }
  0xf6   :  { %v3343_v29 = vpop.f32.mrb[0].mxu0  ;;  %3667 = vmatprep.subr.bf16.mxu1 %v3987_v39  ;;  %v2940_v39 = vld [vmem:[%s4897_s5] sm:$0xff] }
  0xf7   :  { %v3365_v31 = vpop.f32.mrb[0].mxu1  ;;  %v3344_v33 = vpop.f32.mrb[1].mxu0 }
  0xf8   :  { %v3366_v34 = vpop.f32.mrb[1].mxu1  ;;  %v3345_v35 = vadd.f32 %v3344_v33, %v3343_v29  ;;  %v3346_v38 = vpop.f32.mrb[2].mxu0  ;;  %3646 = vmatpush3.bf16.msra.mxu0 %v3988_v42  ;;  %v2851_v33 = vld [vmem:[%s4896_s3] sm:$0xff] }
  0xf9   :  { %v3367_v36 = vadd.f32 %v3366_v34, %v3365_v31  ;;  %v3368_v40 = vpop.f32.mrb[2].mxu1  ;;  %v3347_v43 = vpop.f32.mrb[3].mxu0  ;;  %3668 = vmatpush3.bf16.msra.mxu1 %v3989_v44  ;;  %3647 = vmatprep.subr.bf16.mxu0 %v3990_v47  ;;  %v2852_v34 = vld [vmem:[%s4896_s3 + $0x8] sm:$0xff]  ;;  %v4003_v38 = vmov 0.0  }
  0xfa   :  { %v2245_v41 = vadd.f32 %v3345_v35, %v3032_v32  ;;  %v3369_v45 = vpop.f32.mrb[3].mxu1  ;;  %3669 = vmatprep.subr.bf16.mxu1 %v3991_v48  ;;  %v3706_v35 = vpack.c.bf16 %v2852_v34, %v2851_v33  ;;  %v2941_v40 = vld [vmem:[%s4897_s5 + $0x8] sm:$0xff]  ;;  %v3324_v33 = vld [vmem:[%s4899_s6] ss:$0 sm:$0xff] }
  0xfc   :  { %v2285_v46 = vadd.f32 %v3367_v36, %v2245_v41  ;;  %3648 = vmatpush3.bf16.msra.mxu0 %v3992_v49  ;;  %v4002_v36 = vmov 0.0|0.0   ;;  %v3709_v41 = vpack.c.bf16 %v2941_v40, %v2940_v39 }
  0xfd   :  { %3670 = vmatpush3.bf16.msra.mxu1 %v3993_v50  ;;  %3649 = vmatprep.subr.bf16.mxu0 %v3994_v51 }
  0xfe   :  { %3671 = vmatprep.subr.bf16.mxu1 %v3995_v52 }
 0x100   :  { %3650 = vmatpush3.bf16.msra.mxu0 %v3996_v53 }
 0x101   :  { %3672 = vmatpush3.bf16.msra.mxu1 %v3997_v54  ;;  %3705 = vmatprep.subr.bf16.mxu0 %v4002_v36 }
 0x102   :  { %3708 = vmatprep.subr.bf16.mxu1 %v4002_v36 }
 0x103   :  { %2803 = vmatmul.mubr.bf16.vlgmr.msra.gmra.mrb[28].mxu0 %v3061_v57 }
 0x104   :  { %2843 = vmatmul.mubr.bf16.vlgmr.msra.gmra.mrb[28].mxu1 %v3063_v59  ;;  %3707 = vmatpush3.bf16.msra.mxu0 %v3706_v35 }
 0x105   :  { %3691 = vmatprep.subr.mxu0 %v4003_v38  ;;  %3693 = vmatprep.mubr.msk.f32.mxu0 %vm4004_vm1, %v4003_v38 }
 0x106   :  { %3702 = vmatprep.mubr.msk.f32.mxu1 %vm4004_vm1, %v4003_v38  ;;  %3710 = vmatpush3.bf16.msra.mxu1 %v3709_v41 }
 0x107   :  { %3700 = vmatprep.subr.mxu1 %v4003_v38 }
 0x108   :  { %3692 = vmatpush3.msk.msra.mxu0 %vm2865_vm0, %v2853_v37 }
 0x116   :  { %v3387_v61 = vpop.f32.mrb[4].mxu0 }
 0x117   :  { %v3409_v62 = vpop.f32.mrb[4].mxu1  ;;  %v3388_v63 = vpop.f32.mrb[5].mxu0 }
 0x118   :  { %v3410_v0 = vpop.f32.mrb[5].mxu1  ;;  %v3389_v1 = vadd.f32 %v3388_v63, %v3387_v61  ;;  %v3390_v3 = vpop.f32.mrb[6].mxu0 }
 0x119   :  { %v3411_v2 = vadd.f32 %v3410_v0, %v3409_v62  ;;  %v3412_v4 = vpop.f32.mrb[6].mxu1  ;;  %v3391_v5 = vpop.f32.mrb[7].mxu0 }
 0x11a   :  { %v3413_v6 = vpop.f32.mrb[7].mxu1  ;;  %v2325_v7 = vadd.f32 %v3389_v1, %v2285_v46 }
 0x11c   :  { %v2365_v8 = vadd.f32 %v3411_v2, %v2325_v7 }
 0x136   :  { %v3431_v9 = vpop.f32.mrb[8].mxu0 }
 0x137   :  { %v3453_v10 = vpop.f32.mrb[8].mxu1  ;;  %v3432_v11 = vpop.f32.mrb[9].mxu0 }
 0x138   :  { %v3433_v12 = vadd.f32 %v3432_v11, %v3431_v9  ;;  %v3454_v13 = vpop.f32.mrb[9].mxu1  ;;  %v3434_v14 = vpop.f32.mrb[10].mxu0 }
 0x139   :  { %v3455_v15 = vadd.f32 %v3454_v13, %v3453_v10  ;;  %v3456_v16 = vpop.f32.mrb[10].mxu1  ;;  %v3435_v17 = vpop.f32.mrb[11].mxu0 }
 0x13a   :  { %v2405_v18 = vadd.f32 %v3433_v12, %v2365_v8  ;;  %v3457_v19 = vpop.f32.mrb[11].mxu1 }
 0x13c   :  { %v2445_v20 = vadd.f32 %v3455_v15, %v2405_v18 }
 0x156   :  { %v3475_v21 = vpop.f32.mrb[12].mxu0 }
 0x157   :  { %v3497_v22 = vpop.f32.mrb[12].mxu1  ;;  %v3476_v23 = vpop.f32.mrb[13].mxu0 }
 0x158   :  { %v3477_v24 = vadd.f32 %v3476_v23, %v3475_v21  ;;  %v3498_v25 = vpop.f32.mrb[13].mxu1  ;;  %v3478_v26 = vpop.f32.mrb[14].mxu0 }
 0x159   :  { %v3499_v27 = vadd.f32 %v3498_v25, %v3497_v22  ;;  %v3500_v28 = vpop.f32.mrb[14].mxu1  ;;  %v3479_v29 = vpop.f32.mrb[15].mxu0 }
 0x15a   :  { %v2485_v30 = vadd.f32 %v3477_v24, %v2445_v20  ;;  %v3501_v31 = vpop.f32.mrb[15].mxu1  ;;  %v3321_v28 = vld [vmem:[%s4898_s4] ss:$0 sm:$0xff] }
 0x15c   :  { %v2525_v32 = vadd.f32 %v3499_v27, %v2485_v30  ;;  %v2942_v27 = vld [vmem:[%s4897_s5 + $0x10] sm:$0xf] }
 0x15d   :  { %3701 = vmatpush3.msk.msra.mxu1 %vm2865_vm0, %v2942_v27 }
 0x176   :  { %v3519_v42 = vpop.f32.mrb[16].mxu0 }
 0x177   :  { %v3541_v43 = vpop.f32.mrb[16].mxu1  ;;  %v3520_v44 = vpop.f32.mrb[17].mxu0 }
 0x178   :  { %v3542_v45 = vpop.f32.mrb[17].mxu1  ;;  %v3521_v46 = vadd.f32 %v3520_v44, %v3519_v42  ;;  %v3522_v48 = vpop.f32.mrb[18].mxu0 }
 0x179   :  { %v3543_v47 = vadd.f32 %v3542_v45, %v3541_v43  ;;  %v3544_v49 = vpop.f32.mrb[18].mxu1  ;;  %v3523_v50 = vpop.f32.mrb[19].mxu0 }
 0x17a   :  { %v3545_v51 = vpop.f32.mrb[19].mxu1  ;;  %v2565_v52 = vadd.f32 %v3521_v46, %v2525_v32 }
 0x17c   :  { %v2605_v53 = vadd.f32 %v3543_v47, %v2565_v52 }
 0x196   :  { %v3563_v54 = vpop.f32.mrb[20].mxu0 }
 0x197   :  { %v3585_v55 = vpop.f32.mrb[20].mxu1  ;;  %v3564_v56 = vpop.f32.mrb[21].mxu0 }
 0x198   :  { %v3565_v57 = vadd.f32 %v3564_v56, %v3563_v54  ;;  %v3586_v58 = vpop.f32.mrb[21].mxu1  ;;  %v3566_v59 = vpop.f32.mrb[22].mxu0 }
 0x199   :  { %v3587_v60 = vadd.f32 %v3586_v58, %v3585_v55  ;;  %v3588_v61 = vpop.f32.mrb[22].mxu1  ;;  %v3567_v62 = vpop.f32.mrb[23].mxu0 }
 0x19a   :  { %v2645_v63 = vadd.f32 %v3565_v57, %v2605_v53  ;;  %v3589_v0 = vpop.f32.mrb[23].mxu1 }
 0x19c   :  { %v2685_v1 = vadd.f32 %v3587_v60, %v2645_v63 }
 0x1b6   :  { %v3607_v2 = vpop.f32.mrb[24].mxu0 }
 0x1b7   :  { %v3629_v3 = vpop.f32.mrb[24].mxu1  ;;  %v3608_v4 = vpop.f32.mrb[25].mxu0 }
 0x1b8   :  { %v3609_v5 = vadd.f32 %v3608_v4, %v3607_v2  ;;  %v3630_v6 = vpop.f32.mrb[25].mxu1  ;;  %v3610_v7 = vpop.f32.mrb[26].mxu0 }
 0x1b9   :  { %v3631_v8 = vadd.f32 %v3630_v6, %v3629_v3  ;;  %v3632_v9 = vpop.f32.mrb[26].mxu1  ;;  %v3611_v10 = vpop.f32.mrb[27].mxu0 }
 0x1ba   :  { %v2725_v11 = vadd.f32 %v3609_v5, %v2685_v1  ;;  %v3633_v12 = vpop.f32.mrb[27].mxu1 }
 0x1bc   :  { %v2765_v13 = vadd.f32 %v3631_v8, %v2725_v11 }
 0x1d6   :  { %v3651_v14 = vpop.f32.mrb[28].mxu0 }
 0x1d7   :  { %v3673_v15 = vpop.f32.mrb[28].mxu1  ;;  %v3652_v16 = vpop.f32.mrb[29].mxu0 }
 0x1d8   :  { %v3653_v17 = vadd.f32 %v3652_v16, %v3651_v14  ;;  %v3674_v18 = vpop.f32.mrb[29].mxu1  ;;  %v3654_v19 = vpop.f32.mrb[30].mxu0 }
 0x1d9   :  { %v3675_v20 = vadd.f32 %v3674_v18, %v3673_v15  ;;  %v3676_v21 = vpop.f32.mrb[30].mxu1  ;;  %v3655_v22 = vpop.f32.mrb[31].mxu0 }
 0x1da   :  { %v2805_v23 = vadd.f32 %v3653_v17, %v2765_v13  ;;  %v3677_v24 = vpop.f32.mrb[31].mxu1 }
 0x1dc   :  { %v2845_v25 = vadd.f32 %v3675_v20, %v2805_v23 }
 0x1de   :  { %v2850_v26 = vmax.f32 %v2845_v25, 0.0 }
 0x1e0   :  { %3694 = vmatmul.mubr.msk.f32.vlgmr.msra.gmra.mrb[32].mxu0 %vm2861_vm2, %v2850_v26 }
 0x2b3   :  { %v2935_v29 = vpop.f32.mrb[32].mxu0 }
 0x2b4   :  { %v2936_v30 = vadd.f32 %v3321_v28, %v2935_v29  ;;  %v3695_v31 = vpop.f32.mrb[33].mxu0 }
 0x2b6   :  { %v2939_v32 = vmax.f32 %v2936_v30, 0.0 }
 0x2b8   :  { %3703 = vmatmul.mubr.msk.f32.vlgmr.msra.gmra.mrb[32].mxu1 %vm2861_vm2, %v2939_v32 }
 0x38b   :  { %v3022_v34 = vpop.f32.mrb[32].mxu1 }
 0x38c   :  { %v3023_v35 = vadd.f32 %v3324_v33, %v3022_v34  ;;  %v3704_v36 = vpop.f32.mrb[33].mxu1 }
 0x38e   :  { %3027 = vst.msk [vmem:[%s4900_s7] sm:$0xff] %vm3026_vm3, %v3023_v35 }

</bundles_post_ra>
